<compile_context>
chip_gen: v6e
topology: v6e:2x2x1
jax: 0.10.0
libtpu: 0.0.40
codegen_flags: <defaults>
</compile_context>

<pallas_src>
import jax
import jax.numpy as jnp
from jax import lax
from jax.experimental import pallas as pl
from jax.experimental.pallas import tpu as pltpu


# ----------------------------------------------------------------------------
# Pallas kernel: forward algorithm (log-partition / denominator).
# ----------------------------------------------------------------------------
def _crf_forward_kernel(tmax_ref, start_ref, end_ref, exp_trans_ref,
                        emis_ref, mask_ref, denom_ref, alpha_ref):
    # emis_ref : (tl, tb, T)  time-major emission tile
    # mask_ref : (tl, tb, 1)
    # start/end: (1, T), exp_trans: (T, T), tmax: (1,1) SMEM scalar
    # denom_ref: (tb, 1) output (written at the last time tile)
    # alpha_ref: (tb, T) VMEM scratch carried across time tiles
    tl = emis_ref.shape[0]
    l = pl.program_id(1)
    n_l = pl.num_programs(1)

    t_max = tmax_ref[0, 0]
    exp_trans = exp_trans_ref[...]                       # (T, T), values in (0, 1]

    def step(i, alpha):
        e_i = emis_ref[i]                                # (tb, T)
        m_i = mask_ref[i]                                # (tb, 1)
        m = jnp.max(alpha, axis=-1, keepdims=True)       # (tb, 1)
        p = jnp.exp(alpha - m)                           # (tb, T), in (0, 1]
        s = jnp.dot(p, exp_trans,                        # MXU contraction over prev tag
                    preferred_element_type=jnp.float32)  # (tb, T)
        new = m + t_max + jnp.log(s) + e_i
        return jnp.where(m_i > 0.0, new, alpha)

    unroll = True if tl <= 16 else 4

    @pl.when(l == 0)
    def _():
        alpha0 = start_ref[...] + emis_ref[0]            # (tb, T)
        alpha_ref[...] = lax.fori_loop(1, tl, step, alpha0, unroll=unroll)

    @pl.when(l != 0)
    def _():
        alpha_ref[...] = lax.fori_loop(0, tl, step, alpha_ref[...],
                                       unroll=unroll)

    @pl.when(l == n_l - 1)
    def _():
        a = alpha_ref[...] + end_ref[...]                # (tb, T)
        amax = jnp.max(a, axis=-1, keepdims=True)
        denom_ref[...] = amax + jnp.log(
            jnp.sum(jnp.exp(a - amax), axis=-1, keepdims=True))


# ----------------------------------------------------------------------------
# Tiling helpers
# ----------------------------------------------------------------------------
def _round_up(x, m):
    return (x + m - 1) // m * m


def _choose_tiles(B, L, T, tb, tl):
    if tb is None:
        tb = B if B <= 8 else min(_round_up(B, 8), 64)
    B_pad = _round_up(B, tb)

    lane_t = _round_up(max(T, 1), 128)
    sub_tb = _round_up(tb, 8)

    def stream_bytes(t):
        # double-buffered emission + mask tiles in VMEM (f32, padded layout)
        return 2 * t * sub_tb * (lane_t + 128) * 4

    if tl is None:
        tl = min(L, 64)
        budget = 24 * 1024 * 1024          # safe on v7x's 32 MiB default scope
        while tl > 1 and stream_bytes(tl) > budget:
            tl = max(1, tl // 2)
    L_pad = _round_up(L, tl)
    return tb, B_pad, tl, L_pad


# ----------------------------------------------------------------------------
# Denominator (log-partition) via the Pallas kernel
# ----------------------------------------------------------------------------
def crf_denominator_pallas(emis, mask, start_trans, end_trans, trans,
                           *, tb=None, tl=None):
    B, L, T = emis.shape
    tb, B_pad, tl, L_pad = _choose_tiles(B, L, T, tb, tl)

    # Hoist exp(trans - max(trans)) out of the recursion (computed once).
    trans = trans.astype(jnp.float32)
    t_max = jnp.max(trans)
    exp_trans = jnp.exp(trans - t_max)
    t_max_arr = t_max.reshape(1, 1)

    # Time-major, padded. Padded steps carry mask=0 (recursion no-op); padded
    # batch rows are sliced off below.
    emis_t = jnp.transpose(emis.astype(jnp.float32), (1, 0, 2))            # (L,B,T)
    mask_t = jnp.transpose(mask.astype(jnp.float32), (1, 0))[:, :, None]   # (L,B,1)
    emis_t = jnp.pad(emis_t, ((0, L_pad - L), (0, B_pad - B), (0, 0)))
    mask_t = jnp.pad(mask_t, ((0, L_pad - L), (0, B_pad - B), (0, 0)))

    start2 = start_trans.reshape(1, T).astype(jnp.float32)
    end2 = end_trans.reshape(1, T).astype(jnp.float32)

    grid = (B_pad // tb, L_pad // tl)

    denom = pl.pallas_call(
        _crf_forward_kernel,
        out_shape=jax.ShapeDtypeStruct((B_pad, 1), jnp.float32),
        grid_spec=pltpu.PrefetchScalarGridSpec(
            num_scalar_prefetch=0,
            grid=grid,
            in_specs=[
                pl.BlockSpec(memory_space=pltpu.MemorySpace.SMEM),          # t_max
                pl.BlockSpec((1, T), lambda b, l: (0, 0)),                  # start
                pl.BlockSpec((1, T), lambda b, l: (0, 0)),                  # end
                pl.BlockSpec((T, T), lambda b, l: (0, 0)),                  # exp(trans)
                pl.BlockSpec((tl, tb, T), lambda b, l: (l, b, 0)),          # emissions
                pl.BlockSpec((tl, tb, 1), lambda b, l: (l, b, 0)),          # mask
            ],
            out_specs=pl.BlockSpec((tb, 1), lambda b, l: (b, 0)),
            scratch_shapes=[pltpu.VMEM((tb, T), jnp.float32)],              # alpha
        ),
        compiler_params=pltpu.CompilerParams(
            dimension_semantics=("parallel", "arbitrary"),
            vmem_limit_bytes=64 * 1024 * 1024,
        ),
    )(t_max_arr, start2, end2, exp_trans, emis_t, mask_t)

    return denom[:B, 0]


# ----------------------------------------------------------------------------
# Numerator (gold-path score): trivial vectorized gathers in plain JAX.
# ----------------------------------------------------------------------------
def crf_numerator_jax(emis, tags, mask, start_trans, end_trans, trans):
    B, L, T = emis.shape
    maskf = mask.astype(jnp.float32)
    tags = tags.astype(jnp.int32)
    ar = jnp.arange(B)

    emis_tag = jnp.take_along_axis(
        emis.astype(jnp.float32), tags[:, :, None], axis=2)[..., 0]        # (B, L)
    score = start_trans[tags[:, 0]] + emis_tag[:, 0]
    if L > 1:
        trans_sc = trans[tags[:, :-1], tags[:, 1:]]                        # (B, L-1)
        score = score + jnp.sum((trans_sc + emis_tag[:, 1:]) * maskf[:, 1:],
                                axis=1)
    seq_lens = mask.astype(jnp.int32).sum(axis=1)
    last_tags = tags[ar, seq_lens - 1]
    return score + end_trans[last_tags]


def crf_nll_pallas(emis, tags, mask, start_trans, end_trans, trans,
                   *, tb=None, tl=None):
    """NLL = sum_b (log Z_b - score(gold path)_b), matching CRFLayer.forward."""
    numerator = crf_numerator_jax(emis, tags, mask, start_trans, end_trans, trans)
    denominator = crf_denominator_pallas(emis, mask, start_trans, end_trans,
                                         trans, tb=tb, tl=tl)
    return jnp.sum(denominator - numerator)


# ----------------------------------------------------------------------------
# Pure-JAX mirror of the PyTorch forward, for validation.
# ----------------------------------------------------------------------------
def crf_nll_reference(emis, tags, mask, start_trans, end_trans, trans):
    B, L, T = emis.shape
    maskf = mask.astype(jnp.float32)
    ar = jnp.arange(B)

    score = start_trans[tags[:, 0]] + emis[ar, 0, tags[:, 0]]
    for i in range(1, L):
        trans_score = trans[tags[:, i - 1], tags[:, i]] * maskf[:, i]
        emiss_score = emis[ar, i, tags[:, i]] * maskf[:, i]
        score = score + trans_score + emiss_score
    seq_lens = mask.astype(jnp.int32).sum(axis=1)
    last_tags = tags[ar, seq_lens - 1]
    numerator = score + end_trans[last_tags]

    alpha = start_trans + emis[:, 0, :]
    for i in range(1, L):
        nxt = alpha[:, :, None] + trans[None] + emis[:, i, None, :]
        nxt = jax.scipy.special.logsumexp(nxt, axis=1)
        alpha = jnp.where(mask[:, i][:, None] > 0, nxt, alpha)
    denominator = jax.scipy.special.logsumexp(alpha + end_trans, axis=1)
    return jnp.sum(denominator - numerator)


# ----------------------------------------------------------------------------
if __name__ == "__main__":
    def run_case(B, L, T, tl, key):
        k1, k2, k3, k4, k5, k6 = jax.random.split(key, 6)
        # parameter init matching nn.init.uniform_(-0.1, 0.1)
        start_trans = jax.random.uniform(k1, (T,), jnp.float32, -0.1, 0.1)
        end_trans = jax.random.uniform(k2, (T,), jnp.float32, -0.1, 0.1)
        trans = jax.random.uniform(k3, (T, T), jnp.float32, -0.1, 0.1)

        emis = jax.random.normal(k4, (B, L, T), jnp.float32)
        tags = jax.random.randint(k5, (B, L), 0, T, jnp.int32)
        lens = jax.random.randint(k6, (B,), 1, L + 1, jnp.int32)  # lengths >= 1
        mask = (jnp.arange(L)[None, :] < lens[:, None]).astype(jnp.uint8)

        nll = jax.block_until_ready(
            crf_nll_pallas(emis, tags, mask, start_trans, end_trans, trans,
                           tl=tl))
        ref = crf_nll_reference(emis, tags, mask, start_trans, end_trans, trans)
        assert jnp.allclose(nll, ref, rtol=1e-4, atol=1e-4), (B, L, T, nll, ref)

    key = jax.random.PRNGKey(0)
    k1, k2 = jax.random.split(key)
    # toy shapes consistent with the module; tl=4 exercises the pipelined
    # multi-tile time axis; the second case exercises batch/time padding.
    run_case(B=2, L=8, T=5, tl=4, key=k1)
    run_case(B=10, L=7, T=6, tl=4, key=k2)
    print("KERNEL_OK")
</pallas_src>

<mosaic_0001>
module attributes {stable_mosaic.version = 11 : i64} {
  func.func @_crf_forward_kernel(%arg0: i32, %arg1: i32, %arg2: memref<1x1xf32, #tpu.memory_space<smem>>, %arg3: memref<1x5xf32, #tpu.memory_space<vmem>>, %arg4: memref<1x5xf32, #tpu.memory_space<vmem>>, %arg5: memref<5x5xf32, #tpu.memory_space<vmem>>, %arg6: memref<4x2x5xf32, #tpu.memory_space<vmem>>, %arg7: memref<4x2x1xf32, #tpu.memory_space<vmem>>, %arg8: memref<2x1xf32, #tpu.memory_space<vmem>>, %arg9: memref<2x5xf32, #tpu.memory_space<vmem>>) attributes {dimension_semantics = [#tpu.dimension_semantics<parallel>, #tpu.dimension_semantics<arbitrary>], iteration_bounds = array<i64: 1, 2>, scalar_prefetch = 0 : i64, scratch_operands = 1 : i64, tpu.core_type = #tpu.core_type<tc>, window_params = [{transform_indices = @transform_0, window_bounds = array<i64: 1, 1>}, {pipeline_mode = #tpu.pipeline_mode<synchronous>, transform_indices = @transform_1, window_bounds = array<i64: 1, 5>}, {pipeline_mode = #tpu.pipeline_mode<synchronous>, transform_indices = @transform_2, window_bounds = array<i64: 1, 5>}, {pipeline_mode = #tpu.pipeline_mode<synchronous>, transform_indices = @transform_3, window_bounds = array<i64: 5, 5>}, {transform_indices = @transform_4, window_bounds = array<i64: 4, 2, 5>}, {transform_indices = @transform_5, window_bounds = array<i64: 4, 2, 1>}, {transform_indices = @transform_6, window_bounds = array<i64: 2, 1>}]} {
    %c0 = arith.constant 0 : index
    %c0_0 = arith.constant 0 : index
    %0 = memref.load %arg2[%c0, %c0_0] : memref<1x1xf32, #tpu.memory_space<smem>>
    %c0_1 = arith.constant 0 : index
    %c0_2 = arith.constant 0 : index
    %1 = vector.load %arg5[%c0_1, %c0_2] : memref<5x5xf32, #tpu.memory_space<vmem>>, vector<5x5xf32>
    %c0_i32 = arith.constant 0 : i32
    %2 = arith.cmpi eq, %arg1, %c0_i32 : i32
    %3 = arith.extui %2 : i1 to i32
    %c0_i32_3 = arith.constant 0 : i32
    %4 = arith.cmpi ne, %3, %c0_i32_3 : i32
    scf.if %4 {
      %c0_7 = arith.constant 0 : index
      %c0_8 = arith.constant 0 : index
      %11 = vector.load %arg3[%c0_7, %c0_8] : memref<1x5xf32, #tpu.memory_space<vmem>>, vector<1x5xf32>
      %c0_9 = arith.constant 0 : index
      %c0_10 = arith.constant 0 : index
      %c0_11 = arith.constant 0 : index
      %12 = vector.load %arg6[%c0_9, %c0_10, %c0_11] : memref<4x2x5xf32, #tpu.memory_space<vmem>>, vector<1x2x5xf32>
      %13 = vector.shape_cast %12 : vector<1x2x5xf32> to vector<2x5xf32>
      %14 = vector.broadcast %11 : vector<1x5xf32> to vector<2x5xf32>
      %15 = arith.addf %14, %13 : vector<2x5xf32>
      %c1_i32_12 = arith.constant 1 : i32
      %16 = arith.index_cast %c1_i32_12 : i32 to index
      %c0_13 = arith.constant 0 : index
      %c0_14 = arith.constant 0 : index
      %17 = vector.load %arg6[%16, %c0_13, %c0_14] : memref<4x2x5xf32, #tpu.memory_space<vmem>>, vector<1x2x5xf32>
      %18 = vector.shape_cast %17 : vector<1x2x5xf32> to vector<2x5xf32>
      %19 = arith.index_cast %c1_i32_12 : i32 to index
      %c0_15 = arith.constant 0 : index
      %c0_16 = arith.constant 0 : index
      %20 = vector.load %arg7[%19, %c0_15, %c0_16] : memref<4x2x1xf32, #tpu.memory_space<vmem>>, vector<1x2x1xf32>
      %21 = vector.shape_cast %20 : vector<1x2x1xf32> to vector<2x1xf32>
      %cst = arith.constant dense<0xFF800000> : vector<2xf32>
      %22 = vector.multi_reduction <maximumf>, %15, %cst [1] : vector<2x5xf32> to vector<2xf32>
      %23 = vector.shape_cast %22 : vector<2xf32> to vector<2x1xf32>
      %24 = vector.broadcast %23 : vector<2x1xf32> to vector<2x5xf32>
      %25 = arith.subf %15, %24 : vector<2x5xf32>
      %26 = math.exp %25 : vector<2x5xf32>
      %cst_17 = arith.constant dense<0.000000e+00> : vector<2x5xf32>
      %27 = tpu.matmul %26, %1, %cst_17 {dimension_numbers = #tpu.dot_dimension_numbers<[1], [0], [0], [1], [0, 0, 1, 1], [], []>} : vector<2x5xf32>, vector<5x5xf32>, vector<2x5xf32> -> vector<2x5xf32>
      %28 = vector.broadcast %0 : f32 to vector<2x1xf32>
      %29 = arith.addf %23, %28 : vector<2x1xf32>
      %30 = math.log %27 : vector<2x5xf32>
      %31 = vector.broadcast %29 : vector<2x1xf32> to vector<2x5xf32>
      %32 = arith.addf %31, %30 : vector<2x5xf32>
      %33 = arith.addf %32, %18 : vector<2x5xf32>
      %cst_18 = arith.constant 0.000000e+00 : f32
      %34 = vector.broadcast %cst_18 : f32 to vector<2x1xf32>
      %35 = arith.cmpf ogt, %21, %34 : vector<2x1xf32>
      %36 = vector.shape_cast %35 : vector<2x1xi1> to vector<2x1xi1>
      %37 = vector.broadcast %36 : vector<2x1xi1> to vector<2x5xi1>
      %38 = arith.select %37, %33, %15 : vector<2x5xi1>, vector<2x5xf32>
      %c2_i32 = arith.constant 2 : i32
      %39 = arith.index_cast %c2_i32 : i32 to index
      %c0_19 = arith.constant 0 : index
      %c0_20 = arith.constant 0 : index
      %40 = vector.load %arg6[%39, %c0_19, %c0_20] : memref<4x2x5xf32, #tpu.memory_space<vmem>>, vector<1x2x5xf32>
      %41 = vector.shape_cast %40 : vector<1x2x5xf32> to vector<2x5xf32>
      %42 = arith.index_cast %c2_i32 : i32 to index
      %c0_21 = arith.constant 0 : index
      %c0_22 = arith.constant 0 : index
      %43 = vector.load %arg7[%42, %c0_21, %c0_22] : memref<4x2x1xf32, #tpu.memory_space<vmem>>, vector<1x2x1xf32>
      %44 = vector.shape_cast %43 : vector<1x2x1xf32> to vector<2x1xf32>
      %cst_23 = arith.constant dense<0xFF800000> : vector<2xf32>
      %45 = vector.multi_reduction <maximumf>, %38, %cst_23 [1] : vector<2x5xf32> to vector<2xf32>
      %46 = vector.shape_cast %45 : vector<2xf32> to vector<2x1xf32>
      %47 = vector.broadcast %46 : vector<2x1xf32> to vector<2x5xf32>
      %48 = arith.subf %38, %47 : vector<2x5xf32>
      %49 = math.exp %48 : vector<2x5xf32>
      %cst_24 = arith.constant dense<0.000000e+00> : vector<2x5xf32>
      %50 = tpu.matmul %49, %1, %cst_24 {dimension_numbers = #tpu.dot_dimension_numbers<[1], [0], [0], [1], [0, 0, 1, 1], [], []>} : vector<2x5xf32>, vector<5x5xf32>, vector<2x5xf32> -> vector<2x5xf32>
      %51 = vector.broadcast %0 : f32 to vector<2x1xf32>
      %52 = arith.addf %46, %51 : vector<2x1xf32>
      %53 = math.log %50 : vector<2x5xf32>
      %54 = vector.broadcast %52 : vector<2x1xf32> to vector<2x5xf32>
      %55 = arith.addf %54, %53 : vector<2x5xf32>
      %56 = arith.addf %55, %41 : vector<2x5xf32>
      %cst_25 = arith.constant 0.000000e+00 : f32
      %57 = vector.broadcast %cst_25 : f32 to vector<2x1xf32>
      %58 = arith.cmpf ogt, %44, %57 : vector<2x1xf32>
      %59 = vector.shape_cast %58 : vector<2x1xi1> to vector<2x1xi1>
      %60 = vector.broadcast %59 : vector<2x1xi1> to vector<2x5xi1>
      %61 = arith.select %60, %56, %38 : vector<2x5xi1>, vector<2x5xf32>
      %c3_i32 = arith.constant 3 : i32
      %62 = arith.index_cast %c3_i32 : i32 to index
      %c0_26 = arith.constant 0 : index
      %c0_27 = arith.constant 0 : index
      %63 = vector.load %arg6[%62, %c0_26, %c0_27] : memref<4x2x5xf32, #tpu.memory_space<vmem>>, vector<1x2x5xf32>
      %64 = vector.shape_cast %63 : vector<1x2x5xf32> to vector<2x5xf32>
      %65 = arith.index_cast %c3_i32 : i32 to index
      %c0_28 = arith.constant 0 : index
      %c0_29 = arith.constant 0 : index
      %66 = vector.load %arg7[%65, %c0_28, %c0_29] : memref<4x2x1xf32, #tpu.memory_space<vmem>>, vector<1x2x1xf32>
      %67 = vector.shape_cast %66 : vector<1x2x1xf32> to vector<2x1xf32>
      %cst_30 = arith.constant dense<0xFF800000> : vector<2xf32>
      %68 = vector.multi_reduction <maximumf>, %61, %cst_30 [1] : vector<2x5xf32> to vector<2xf32>
      %69 = vector.shape_cast %68 : vector<2xf32> to vector<2x1xf32>
      %70 = vector.broadcast %69 : vector<2x1xf32> to vector<2x5xf32>
      %71 = arith.subf %61, %70 : vector<2x5xf32>
      %72 = math.exp %71 : vector<2x5xf32>
      %cst_31 = arith.constant dense<0.000000e+00> : vector<2x5xf32>
      %73 = tpu.matmul %72, %1, %cst_31 {dimension_numbers = #tpu.dot_dimension_numbers<[1], [0], [0], [1], [0, 0, 1, 1], [], []>} : vector<2x5xf32>, vector<5x5xf32>, vector<2x5xf32> -> vector<2x5xf32>
      %74 = vector.broadcast %0 : f32 to vector<2x1xf32>
      %75 = arith.addf %69, %74 : vector<2x1xf32>
      %76 = math.log %73 : vector<2x5xf32>
      %77 = vector.broadcast %75 : vector<2x1xf32> to vector<2x5xf32>
      %78 = arith.addf %77, %76 : vector<2x5xf32>
      %79 = arith.addf %78, %64 : vector<2x5xf32>
      %cst_32 = arith.constant 0.000000e+00 : f32
      %80 = vector.broadcast %cst_32 : f32 to vector<2x1xf32>
      %81 = arith.cmpf ogt, %67, %80 : vector<2x1xf32>
      %82 = vector.shape_cast %81 : vector<2x1xi1> to vector<2x1xi1>
      %83 = vector.broadcast %82 : vector<2x1xi1> to vector<2x5xi1>
      %84 = arith.select %83, %79, %61 : vector<2x5xi1>, vector<2x5xf32>
      %c3_i32_33 = arith.constant 3 : i32
      %c0_34 = arith.constant 0 : index
      %c0_35 = arith.constant 0 : index
      %85 = vector.load %arg9[%c0_34, %c0_35] : memref<2x5xf32, #tpu.memory_space<vmem>>, vector<2x5xf32>
      tpu.vector_store %arg9[%c0_34, %c0_35], %84 {strides = array<i32>} : memref<2x5xf32, #tpu.memory_space<vmem>>, vector<2x5xf32>,
    } else {
    }
    %c0_i32_4 = arith.constant 0 : i32
    %5 = arith.cmpi ne, %arg1, %c0_i32_4 : i32
    %6 = arith.extui %5 : i1 to i32
    %c0_i32_5 = arith.constant 0 : i32
    %7 = arith.cmpi ne, %6, %c0_i32_5 : i32
    scf.if %7 {
      %c0_7 = arith.constant 0 : index
      %c0_8 = arith.constant 0 : index
      %11 = vector.load %arg9[%c0_7, %c0_8] : memref<2x5xf32, #tpu.memory_space<vmem>>, vector<2x5xf32>
      %c0_i32_9 = arith.constant 0 : i32
      %12 = arith.index_cast %c0_i32_9 : i32 to index
      %c0_10 = arith.constant 0 : index
      %c0_11 = arith.constant 0 : index
      %13 = vector.load %arg6[%12, %c0_10, %c0_11] : memref<4x2x5xf32, #tpu.memory_space<vmem>>, vector<1x2x5xf32>
      %14 = vector.shape_cast %13 : vector<1x2x5xf32> to vector<2x5xf32>
      %15 = arith.index_cast %c0_i32_9 : i32 to index
      %c0_12 = arith.constant 0 : index
      %c0_13 = arith.constant 0 : index
      %16 = vector.load %arg7[%15, %c0_12, %c0_13] : memref<4x2x1xf32, #tpu.memory_space<vmem>>, vector<1x2x1xf32>
      %17 = vector.shape_cast %16 : vector<1x2x1xf32> to vector<2x1xf32>
      %cst = arith.constant dense<0xFF800000> : vector<2xf32>
      %18 = vector.multi_reduction <maximumf>, %11, %cst [1] : vector<2x5xf32> to vector<2xf32>
      %19 = vector.shape_cast %18 : vector<2xf32> to vector<2x1xf32>
      %20 = vector.broadcast %19 : vector<2x1xf32> to vector<2x5xf32>
      %21 = arith.subf %11, %20 : vector<2x5xf32>
      %22 = math.exp %21 : vector<2x5xf32>
      %cst_14 = arith.constant dense<0.000000e+00> : vector<2x5xf32>
      %23 = tpu.matmul %22, %1, %cst_14 {dimension_numbers = #tpu.dot_dimension_numbers<[1], [0], [0], [1], [0, 0, 1, 1], [], []>} : vector<2x5xf32>, vector<5x5xf32>, vector<2x5xf32> -> vector<2x5xf32>
      %24 = vector.broadcast %0 : f32 to vector<2x1xf32>
      %25 = arith.addf %19, %24 : vector<2x1xf32>
      %26 = math.log %23 : vector<2x5xf32>
      %27 = vector.broadcast %25 : vector<2x1xf32> to vector<2x5xf32>
      %28 = arith.addf %27, %26 : vector<2x5xf32>
      %29 = arith.addf %28, %14 : vector<2x5xf32>
      %cst_15 = arith.constant 0.000000e+00 : f32
      %30 = vector.broadcast %cst_15 : f32 to vector<2x1xf32>
      %31 = arith.cmpf ogt, %17, %30 : vector<2x1xf32>
      %32 = vector.shape_cast %31 : vector<2x1xi1> to vector<2x1xi1>
      %33 = vector.broadcast %32 : vector<2x1xi1> to vector<2x5xi1>
      %34 = arith.select %33, %29, %11 : vector<2x5xi1>, vector<2x5xf32>
      %c1_i32_16 = arith.constant 1 : i32
      %35 = arith.index_cast %c1_i32_16 : i32 to index
      %c0_17 = arith.constant 0 : index
      %c0_18 = arith.constant 0 : index
      %36 = vector.load %arg6[%35, %c0_17, %c0_18] : memref<4x2x5xf32, #tpu.memory_space<vmem>>, vector<1x2x5xf32>
      %37 = vector.shape_cast %36 : vector<1x2x5xf32> to vector<2x5xf32>
      %38 = arith.index_cast %c1_i32_16 : i32 to index
      %c0_19 = arith.constant 0 : index
      %c0_20 = arith.constant 0 : index
      %39 = vector.load %arg7[%38, %c0_19, %c0_20] : memref<4x2x1xf32, #tpu.memory_space<vmem>>, vector<1x2x1xf32>
      %40 = vector.shape_cast %39 : vector<1x2x1xf32> to vector<2x1xf32>
      %cst_21 = arith.constant dense<0xFF800000> : vector<2xf32>
      %41 = vector.multi_reduction <maximumf>, %34, %cst_21 [1] : vector<2x5xf32> to vector<2xf32>
      %42 = vector.shape_cast %41 : vector<2xf32> to vector<2x1xf32>
      %43 = vector.broadcast %42 : vector<2x1xf32> to vector<2x5xf32>
      %44 = arith.subf %34, %43 : vector<2x5xf32>
      %45 = math.exp %44 : vector<2x5xf32>
      %cst_22 = arith.constant dense<0.000000e+00> : vector<2x5xf32>
      %46 = tpu.matmul %45, %1, %cst_22 {dimension_numbers = #tpu.dot_dimension_numbers<[1], [0], [0], [1], [0, 0, 1, 1], [], []>} : vector<2x5xf32>, vector<5x5xf32>, vector<2x5xf32> -> vector<2x5xf32>
      %47 = vector.broadcast %0 : f32 to vector<2x1xf32>
      %48 = arith.addf %42, %47 : vector<2x1xf32>
      %49 = math.log %46 : vector<2x5xf32>
      %50 = vector.broadcast %48 : vector<2x1xf32> to vector<2x5xf32>
      %51 = arith.addf %50, %49 : vector<2x5xf32>
      %52 = arith.addf %51, %37 : vector<2x5xf32>
      %cst_23 = arith.constant 0.000000e+00 : f32
      %53 = vector.broadcast %cst_23 : f32 to vector<2x1xf32>
      %54 = arith.cmpf ogt, %40, %53 : vector<2x1xf32>
      %55 = vector.shape_cast %54 : vector<2x1xi1> to vector<2x1xi1>
      %56 = vector.broadcast %55 : vector<2x1xi1> to vector<2x5xi1>
      %57 = arith.select %56, %52, %34 : vector<2x5xi1>, vector<2x5xf32>
      %c2_i32 = arith.constant 2 : i32
      %58 = arith.index_cast %c2_i32 : i32 to index
      %c0_24 = arith.constant 0 : index
      %c0_25 = arith.constant 0 : index
      %59 = vector.load %arg6[%58, %c0_24, %c0_25] : memref<4x2x5xf32, #tpu.memory_space<vmem>>, vector<1x2x5xf32>
      %60 = vector.shape_cast %59 : vector<1x2x5xf32> to vector<2x5xf32>
      %61 = arith.index_cast %c2_i32 : i32 to index
      %c0_26 = arith.constant 0 : index
      %c0_27 = arith.constant 0 : index
      %62 = vector.load %arg7[%61, %c0_26, %c0_27] : memref<4x2x1xf32, #tpu.memory_space<vmem>>, vector<1x2x1xf32>
      %63 = vector.shape_cast %62 : vector<1x2x1xf32> to vector<2x1xf32>
      %cst_28 = arith.constant dense<0xFF800000> : vector<2xf32>
      %64 = vector.multi_reduction <maximumf>, %57, %cst_28 [1] : vector<2x5xf32> to vector<2xf32>
      %65 = vector.shape_cast %64 : vector<2xf32> to vector<2x1xf32>
      %66 = vector.broadcast %65 : vector<2x1xf32> to vector<2x5xf32>
      %67 = arith.subf %57, %66 : vector<2x5xf32>
      %68 = math.exp %67 : vector<2x5xf32>
      %cst_29 = arith.constant dense<0.000000e+00> : vector<2x5xf32>
      %69 = tpu.matmul %68, %1, %cst_29 {dimension_numbers = #tpu.dot_dimension_numbers<[1], [0], [0], [1], [0, 0, 1, 1], [], []>} : vector<2x5xf32>, vector<5x5xf32>, vector<2x5xf32> -> vector<2x5xf32>
      %70 = vector.broadcast %0 : f32 to vector<2x1xf32>
      %71 = arith.addf %65, %70 : vector<2x1xf32>
      %72 = math.log %69 : vector<2x5xf32>
      %73 = vector.broadcast %71 : vector<2x1xf32> to vector<2x5xf32>
      %74 = arith.addf %73, %72 : vector<2x5xf32>
      %75 = arith.addf %74, %60 : vector<2x5xf32>
      %cst_30 = arith.constant 0.000000e+00 : f32
      %76 = vector.broadcast %cst_30 : f32 to vector<2x1xf32>
      %77 = arith.cmpf ogt, %63, %76 : vector<2x1xf32>
      %78 = vector.shape_cast %77 : vector<2x1xi1> to vector<2x1xi1>
      %79 = vector.broadcast %78 : vector<2x1xi1> to vector<2x5xi1>
      %80 = arith.select %79, %75, %57 : vector<2x5xi1>, vector<2x5xf32>
      %c3_i32 = arith.constant 3 : i32
      %81 = arith.index_cast %c3_i32 : i32 to index
      %c0_31 = arith.constant 0 : index
      %c0_32 = arith.constant 0 : index
      %82 = vector.load %arg6[%81, %c0_31, %c0_32] : memref<4x2x5xf32, #tpu.memory_space<vmem>>, vector<1x2x5xf32>
      %83 = vector.shape_cast %82 : vector<1x2x5xf32> to vector<2x5xf32>
      %84 = arith.index_cast %c3_i32 : i32 to index
      %c0_33 = arith.constant 0 : index
      %c0_34 = arith.constant 0 : index
      %85 = vector.load %arg7[%84, %c0_33, %c0_34] : memref<4x2x1xf32, #tpu.memory_space<vmem>>, vector<1x2x1xf32>
      %86 = vector.shape_cast %85 : vector<1x2x1xf32> to vector<2x1xf32>
      %cst_35 = arith.constant dense<0xFF800000> : vector<2xf32>
      %87 = vector.multi_reduction <maximumf>, %80, %cst_35 [1] : vector<2x5xf32> to vector<2xf32>
      %88 = vector.shape_cast %87 : vector<2xf32> to vector<2x1xf32>
      %89 = vector.broadcast %88 : vector<2x1xf32> to vector<2x5xf32>
      %90 = arith.subf %80, %89 : vector<2x5xf32>
      %91 = math.exp %90 : vector<2x5xf32>
      %cst_36 = arith.constant dense<0.000000e+00> : vector<2x5xf32>
      %92 = tpu.matmul %91, %1, %cst_36 {dimension_numbers = #tpu.dot_dimension_numbers<[1], [0], [0], [1], [0, 0, 1, 1], [], []>} : vector<2x5xf32>, vector<5x5xf32>, vector<2x5xf32> -> vector<2x5xf32>
      %93 = vector.broadcast %0 : f32 to vector<2x1xf32>
      %94 = arith.addf %88, %93 : vector<2x1xf32>
      %95 = math.log %92 : vector<2x5xf32>
      %96 = vector.broadcast %94 : vector<2x1xf32> to vector<2x5xf32>
      %97 = arith.addf %96, %95 : vector<2x5xf32>
      %98 = arith.addf %97, %83 : vector<2x5xf32>
      %cst_37 = arith.constant 0.000000e+00 : f32
      %99 = vector.broadcast %cst_37 : f32 to vector<2x1xf32>
      %100 = arith.cmpf ogt, %86, %99 : vector<2x1xf32>
      %101 = vector.shape_cast %100 : vector<2x1xi1> to vector<2x1xi1>
      %102 = vector.broadcast %101 : vector<2x1xi1> to vector<2x5xi1>
      %103 = arith.select %102, %98, %80 : vector<2x5xi1>, vector<2x5xf32>
      %c4_i32 = arith.constant 4 : i32
      %c0_38 = arith.constant 0 : index
      %c0_39 = arith.constant 0 : index
      %104 = vector.load %arg9[%c0_38, %c0_39] : memref<2x5xf32, #tpu.memory_space<vmem>>, vector<2x5xf32>
      tpu.vector_store %arg9[%c0_38, %c0_39], %103 {strides = array<i32>} : memref<2x5xf32, #tpu.memory_space<vmem>>, vector<2x5xf32>,
    } else {
    }
    %c1_i32 = arith.constant 1 : i32
    %8 = arith.cmpi eq, %arg1, %c1_i32 : i32
    %9 = arith.extui %8 : i1 to i32
    %c0_i32_6 = arith.constant 0 : i32
    %10 = arith.cmpi ne, %9, %c0_i32_6 : i32
    scf.if %10 {
      %c0_7 = arith.constant 0 : index
      %c0_8 = arith.constant 0 : index
      %11 = vector.load %arg9[%c0_7, %c0_8] : memref<2x5xf32, #tpu.memory_space<vmem>>, vector<2x5xf32>
      %c0_9 = arith.constant 0 : index
      %c0_10 = arith.constant 0 : index
      %12 = vector.load %arg4[%c0_9, %c0_10] : memref<1x5xf32, #tpu.memory_space<vmem>>, vector<1x5xf32>
      %13 = vector.broadcast %12 : vector<1x5xf32> to vector<2x5xf32>
      %14 = arith.addf %11, %13 : vector<2x5xf32>
      %cst = arith.constant dense<0xFF800000> : vector<2xf32>
      %15 = vector.multi_reduction <maximumf>, %14, %cst [1] : vector<2x5xf32> to vector<2xf32>
      %16 = vector.shape_cast %15 : vector<2xf32> to vector<2x1xf32>
      %17 = vector.broadcast %16 : vector<2x1xf32> to vector<2x5xf32>
      %18 = arith.subf %14, %17 : vector<2x5xf32>
      %19 = math.exp %18 : vector<2x5xf32>
      %cst_11 = arith.constant dense<0.000000e+00> : vector<2xf32>
      %20 = vector.multi_reduction <add>, %19, %cst_11 [1] : vector<2x5xf32> to vector<2xf32>
      %21 = vector.shape_cast %20 : vector<2xf32> to vector<2x1xf32>
      %22 = math.log %21 : vector<2x1xf32>
      %23 = arith.addf %16, %22 : vector<2x1xf32>
      %c0_12 = arith.constant 0 : index
      %c0_13 = arith.constant 0 : index
      %24 = vector.load %arg8[%c0_12, %c0_13] : memref<2x1xf32, #tpu.memory_space<vmem>>, vector<2x1xf32>
      tpu.vector_store %arg8[%c0_12, %c0_13], %23 {strides = array<i32>} : memref<2x1xf32, #tpu.memory_space<vmem>>, vector<2x1xf32>,
    } else {
    }
    return
  }
  func.func @transform_0(%arg0: i32, %arg1: i32) -> (i32, i32) {
    %c0_i32 = arith.constant 0 : i32
    %c0_i32_0 = arith.constant 0 : i32
    %c0_i32_1 = arith.constant 0 : i32
    return %c0_i32, %c0_i32_0 : i32, i32
  }
  func.func @transform_1(%arg0: i32, %arg1: i32) -> (i32, i32) {
    %c0_i32 = arith.constant 0 : i32
    %c0_i32_0 = arith.constant 0 : i32
    %c0_i32_1 = arith.constant 0 : i32
    return %c0_i32, %c0_i32_0 : i32, i32
  }
  func.func @transform_2(%arg0: i32, %arg1: i32) -> (i32, i32) {
    %c0_i32 = arith.constant 0 : i32
    %c0_i32_0 = arith.constant 0 : i32
    %c0_i32_1 = arith.constant 0 : i32
    return %c0_i32, %c0_i32_0 : i32, i32
  }
  func.func @transform_3(%arg0: i32, %arg1: i32) -> (i32, i32) {
    %c0_i32 = arith.constant 0 : i32
    %c0_i32_0 = arith.constant 0 : i32
    %c0_i32_1 = arith.constant 0 : i32
    return %c0_i32, %c0_i32_0 : i32, i32
  }
  func.func @transform_4(%arg0: i32, %arg1: i32) -> (i32, i32, i32) {
    %c0_i32 = arith.constant 0 : i32
    %c0_i32_0 = arith.constant 0 : i32
    return %arg1, %arg0, %c0_i32 : i32, i32, i32
  }
  func.func @transform_5(%arg0: i32, %arg1: i32) -> (i32, i32, i32) {
    %c0_i32 = arith.constant 0 : i32
    %c0_i32_0 = arith.constant 0 : i32
    return %arg1, %arg0, %c0_i32 : i32, i32, i32
  }
  func.func @transform_6(%arg0: i32, %arg1: i32) -> (i32, i32) {
    %c0_i32 = arith.constant 0 : i32
    %c0_i32_0 = arith.constant 0 : i32
    return %arg0, %c0_i32 : i32, i32
  }
}

</mosaic_0001>

<bundles_post_ra>
// kernel: tpu_custom_call.1
= control target key start
LH: loop header
LB: loop body
LE: loop exit
PB: predicated region body
PF: predicated region fallthrough
CT: control target
= control target key end

     0   :  { %s1338_s23 = smov 0   ;;  %s1340_s24 = smov 0   ;;  %s1457_s0 = inlined_call_operand.<no memory space> [shape: f32[1,1], index: 0, kind: input, shape index: {}]   ;;  %s1458_s1 = inlined_call_operand.vmem [shape: f32[1,5], index: 1, kind: input, shape index: {}]   ;;  %s1459_s2 = inlined_call_operand.vmem [shape: f32[1,5], index: 2, kind: input, shape index: {}]   ;;  %s1460_s3 = inlined_call_operand.vmem [shape: f32[5,5], index: 3, kind: input, shape index: {}]   ;;  %s1461_s4 = inlined_call_operand.vmem [shape: f32[8,2,5], index: 4, kind: input, shape index: {}]   ;;  %s1462_s5 = inlined_call_operand.vmem [shape: f32[8,2,1], index: 5, kind: input, shape index: {}]   ;;  %s1463_s6 = inlined_call_operand.vmem [shape: f32[2,1], index: 6, kind: output, shape index: {}]  }
   0x1   :  { %11 = sst [smem:[#allocation3]] %s1457_s0  ;;  %s1342_s25 = smov 0  }
   0x2 LB: > { %s26_s0 = sadd.s32 1, %s1288_s24  ;;  %p1116_p0 = scmp.ge.s32.totalorder %s1292_s25, 1  ;;  %s1292_s25 = sphi %s1342_s25, %s17_s25   ;;  %s1288_s24 = sphi %s1340_s24, %s1465_s24   ;;  %s1284_s23 = sphi %s1338_s23, %s1464_s23  }
   0x3   : > { %p27_p1 = scmp.ge.s32.totalorder %s26_s0, 2  ;;  %p247_p2 = scmp.lt.s32.totalorder %s1292_s25, 3 }
   0x5   : > { %s1467_s0 = smov (%p27_p1, %s26_s0), 0  ;;  %p248_p3 = pnand %p1116_p0, %p247_p2 }
   0x6   : > { %s1117_s26 = sshll.u32 (!%p248_p3), %s1284_s23, 2  ;;  %s1359_s27 = sld [smem:[#allocation3]] (!%p248_p3) }
   0x7   : > { %251 = sbr.rel (%p248_p3) target bundleno = 2954 (0xb8a), region = 44  ;;  %p288_p4 = scmp.lt.s32.totalorder (!%p248_p3), %s1117_s26, 7 }
   0x8   : > { %p1121_p5 = scmp.ne.s32.totalorder (!%p248_p3), %s1284_s23, 0 }
   0xc   : > { %v1364_v0 = vld [vmem:[%s1460_s3] sm:$0x1f]  ;;  %s1469_s26 = smov (!%p288_p4, %s1117_s26), 7  ;;  %314 = sbr.rel (%p1121_p5) target bundleno = 1135 (0x46f), region = 48 }
   0xd   : > { %s1118_s30 = sshll.u32 %s1469_s26, 1 }
   0xe   : > { %s1369_s9 = scalar_lea.vmem %s1461_s4, %s1118_s30  ;;  %s1374_s12 = scalar_lea.vmem %s1462_s5, %s1118_s30 }
  0x11   : > { %v1122_v1 = vld [vmem:[%s1458_s1] ss:$0 sm:$0xff]  ;;  %vm328_vm0 = vcmask 33792   ;;  %vm339_vm1 = vcmask 1044480   ;;  %v1294_v5 = vmov 0.0   ;;  %vm1295_vm2 = vmmov 0  }
  0x12   : > { %v316_v2 = vld [vmem:[%s1369_s9] sm:$0x3]  ;;  %1169 = vmatprep.subr.mxu0 %v1294_v5  ;;  %1171 = vmatprep.mubr.msk.f32.mxu0 %vm1295_vm2, %v1294_v5  ;;  %v1124_v6 = vld [vmem:[%s1374_s12 + $0x2] sm:$0x3]  ;;  %v1132_v7 = vld [vmem:[%s1374_s12 + $0x6] sm:$0x3]  ;;  %v413_v17 = vstv %s1359_s27 }
  0x13   : > { %v323_v3 = vadd.f32 %v1122_v1, %v316_v2  ;;  %1170 = vmatpush3.msk.msra.mxu0 %vm339_vm1, %v1364_v0  ;;  %1174 = vmatprep.subr.mxu1 %v1294_v5  ;;  %v1296_v8 = vmov 0   ;;  %vm419_vm3 = vcmp.gt.f32.partialorder %v1124_v6, 0.0  ;;  %vm609_vm4 = vcmp.gt.f32.partialorder %v1132_v7, 0.0  ;;  %v1123_v21 = vld [vmem:[%s1369_s9 + $0x2] sm:$0x3] }
  0x14   : > { %1175 = vmatpush3.msk.msra.mxu1 %vm339_vm1, %v1364_v0  ;;  %1176 = vmatprep.mubr.msk.f32.mxu1 %vm1295_vm2, %v1294_v5  ;;  %v420_v9 = vsel %vm419_vm3, 1, %v1296_v8  ;;  %v610_v10 = vsel %vm609_vm4, 1, %v1296_v8  ;;  %vm335_vm5 = vcmask 39936   ;;  %v1128_v27 = vld [vmem:[%s1374_s12 + $0x4] sm:$0x3] }
  0x15   : > { %v329_v4 = vsel %vm328_vm0, %v323_v3, -inf  ;;  %1179 = vmatprep.subr.mxu0 %v1294_v5  ;;  %1234 = vset.pattern.permute.xlu0 %v1296_v8  ;;  %vm514_vm7 = vcmp.gt.f32.partialorder %v1128_v27, 0.0  ;;  %v1127_v39 = vld [vmem:[%s1369_s9 + $0x4] sm:$0x3]  ;;  %v1131_v53 = vld [vmem:[%s1369_s9 + $0x6] sm:$0x3] }
  0x16   : > { %330 = vmax.xlane.f32.xlu0 %v329_v4  ;;  %1235 = vset.pattern.permute.xlu1 %v1296_v8  ;;  %v515_v28 = vsel %vm514_vm7, 1, %v1296_v8 }
  0x2c   : > { %422 = vperm.xlu0 %1234, %v420_v9  }
  0x30   : > { %612 = vperm.xlu0 %1234, %v610_v10  }
  0x9f   : > { %v331_v11 = vpop.xlane.xlu0 %330 }
  0xa0   : > { %v332_v12 = vsub.f32 %v323_v3, %v331_v11  ;;  %v414_v19 = vadd.f32 %v413_v17, %v331_v11 }
  0xa2   : > { %v333_v13 = vmul.f32 1.442695, %v332_v12 }
  0xa4   : > { %1236 = vpow2.f32 %v333_v13 }
  0xa7   : > { %v423_v23 = vpop.permute.xlu0 %422 }
  0xa8   : > { %vm424_vm6 = vcmp.eq.s32.totalorder %v423_v23, 1 }
  0xab   : > { %v613_v54 = vpop.permute.xlu0 %612 }
  0xac   : > { %vm614_vm9 = vcmp.eq.s32.totalorder %v613_v54, 1 }
  0xb1   : > { %v1237_v14 = vpop.eup %1236 }
  0xb2   : > { %1172 = vmatmul.mubr.msk.f32.vlgmr.msra.gmra.mxu0 %vm335_vm5, %v1237_v14 }
  0xb3   : > { %1180 = vmatpush3.msk.msra.mxu0 %vm339_vm1, %v1364_v0  ;;  %1181 = vmatprep.mubr.msk.f32.mxu0 %vm1295_vm2, %v1294_v5 }
 0x172   : > { %v409_v15 = vpop.f32.mrf.mxu0 }
 0x173   : > { %1238 = vlog2.f32 %v409_v15 }
 0x174   : > { %v1173_v16 = vpop.f32.mrf.mxu0 }
 0x180   : > { %v1239_v18 = vpop.eup %1238 }
 0x181   : > { %v416_v20 = vmul.f32 0.6931472, %v1239_v18 }
 0x183   : > { %v417_v22 = vadd.f32 %v416_v20, %v414_v19 }
 0x185   : > { %v418_v24 = vadd.f32 %v1123_v21, %v417_v22 }
 0x187   : > { %v425_v25 = vsel %vm424_vm6, %v418_v24, %v323_v3 }
 0x188   : > { %v430_v26 = vsel %vm328_vm0, %v425_v25, -inf }
 0x189   : > { %431 = vmax.xlane.f32.xlu1 %v430_v26 }
 0x19a   : > { %517 = vperm.xlu1 %1235, %v515_v28  }
 0x212   : > { %v432_v29 = vpop.xlane.xlu1 %431 }
 0x213   : > { %v433_v30 = vsub.f32 %v425_v25, %v432_v29  ;;  %v509_v36 = vadd.f32 %v432_v29, %v413_v17 }
 0x215   : > { %v434_v31 = vmul.f32 1.442695, %v433_v30 }
 0x216   : > { %v518_v38 = vpop.permute.xlu1 %517 }
 0x217   : > { %1240 = vpow2.f32 %v434_v31  ;;  %vm519_vm8 = vcmp.eq.s32.totalorder %v518_v38, 1 }
 0x224   : > { %v1241_v32 = vpop.eup %1240 }
 0x225   : > { %1177 = vmatmul.mubr.msk.f32.vlgmr.msra.gmra.mxu1 %vm335_vm5, %v1241_v32 }
 0x2e5   : > { %v505_v33 = vpop.f32.mrf.mxu1 }
 0x2e6   : > { %1242 = vlog2.f32 %v505_v33 }
 0x2e7   : > { %v1178_v34 = vpop.f32.mrf.mxu1 }
 0x2f3   : > { %v1243_v35 = vpop.eup %1242 }
 0x2f4   : > { %v511_v37 = vmul.f32 0.6931472, %v1243_v35 }
 0x2f6   : > { %v512_v40 = vadd.f32 %v511_v37, %v509_v36 }
 0x2f8   : > { %v513_v41 = vadd.f32 %v1127_v39, %v512_v40 }
 0x2fa   : > { %v520_v42 = vsel %vm519_vm8, %v513_v41, %v425_v25 }
 0x2fb   : > { %v525_v43 = vsel %vm328_vm0, %v520_v42, -inf }
 0x2fc   : > { %526 = vmax.xlane.f32.xlu1 %v525_v43 }
 0x385   : > { %v527_v44 = vpop.xlane.xlu1 %526 }
 0x386   : > { %v528_v45 = vsub.f32 %v520_v42, %v527_v44  ;;  %v604_v51 = vadd.f32 %v527_v44, %v413_v17 }
 0x388   : > { %v529_v46 = vmul.f32 1.442695, %v528_v45 }
 0x38a   : > { %1244 = vpow2.f32 %v529_v46 }
 0x397   : > { %v1245_v47 = vpop.eup %1244 }
 0x398   : > { %1182 = vmatmul.mubr.msk.f32.vlgmr.msra.gmra.mxu0 %vm335_vm5, %v1245_v47 }
 0x458   : > { %v600_v48 = vpop.f32.mrf.mxu0 }
 0x459   : > { %1246 = vlog2.f32 %v600_v48 }
 0x45a   : > { %v1183_v49 = vpop.f32.mrf.mxu0 }
 0x466   : > { %v1247_v50 = vpop.eup %1246 }
 0x467   : > { %v606_v52 = vmul.f32 0.6931472, %v1247_v50 }
 0x469   : > { %v607_v55 = vadd.f32 %v606_v52, %v604_v51 }
 0x46b   : > { %v608_v56 = vadd.f32 %v1131_v53, %v607_v55 }
 0x46d   : > { %v615_v57 = vsel %vm614_vm9, %v608_v56, %v520_v42 }
 0x46e   : > { %616 = vst.msk [vmem:[#allocation2] sm:$0x3] %vm328_vm0, %v615_v57 }
 0x46f PF: > { %p1135_p6 = scmp.eq.s32.totalorder %s1284_s23, 0 }
 0x471   : > { %620 = sbr.rel (%p1135_p6) target bundleno = 2628 (0xa44), region = 52 }
 0x476   : > { %v621_v58 = vld [vmem:[#allocation2] sm:$0x3]  ;;  %vm624_vm10 = vcmask 33792   ;;  %vm635_vm11 = vcmask 1044480   ;;  %v1297_v60 = vmov 0.0   ;;  %vm1298_vm12 = vmmov 0  }
 0x477   : > { %v625_v59 = vsel %vm624_vm10, %v621_v58, -inf  ;;  %1184 = vmatprep.subr.mxu0 %v1297_v60  ;;  %1186 = vmatprep.mubr.msk.f32.mxu0 %vm1298_vm12, %v1297_v60  ;;  %v623_v61 = vld [vmem:[%s1374_s12] sm:$0x3]  ;;  %v1143_v62 = vld [vmem:[%s1374_s12 + $0x4] sm:$0x3]  ;;  %v1299_v63 = vmov 0   ;;  %v1419_v9 = vstv %s1359_s27 }
 0x478   : > { %626 = vmax.xlane.f32.xlu0 %v625_v59  ;;  %1185 = vmatpush3.msk.msra.mxu0 %vm635_vm11, %v1364_v0  ;;  %vm715_vm13 = vcmp.gt.f32.partialorder %v623_v61, 0.0  ;;  %vm905_vm14 = vcmp.gt.f32.partialorder %v1143_v62, 0.0  ;;  %vm631_vm15 = vcmask 39936   ;;  %v622_v13 = vld [vmem:[%s1369_s9] sm:$0x3] }
 0x479   : > { %1189 = vmatprep.subr.mxu1 %v1297_v60  ;;  %1191 = vmatprep.mubr.msk.f32.mxu1 %vm1298_vm12, %v1297_v60  ;;  %v716_v1 = vsel %vm715_vm13, 1, %v1299_v63  ;;  %v906_v2 = vsel %vm905_vm14, 1, %v1299_v63  ;;  %v1139_v19 = vld [vmem:[%s1374_s12 + $0x2] sm:$0x3]  ;;  %v1142_v46 = vld [vmem:[%s1369_s9 + $0x4] sm:$0x3] }
 0x47a   : > { %1190 = vmatpush3.msk.msra.mxu1 %vm635_vm11, %v1364_v0  ;;  %1194 = vmatprep.subr.mxu0 %v1297_v60  ;;  %vm810_vm1 = vcmp.gt.f32.partialorder %v1139_v19, 0.0  ;;  %v1138_v31 = vld [vmem:[%s1369_s9 + $0x2] sm:$0x3]  ;;  %v1146_v61 = vld [vmem:[%s1369_s9 + $0x6] sm:$0x3] }
 0x47b   : > { %1199 = vmatprep.subr.mxu1 %v1297_v60  ;;  %1248 = vset.pattern.permute.xlu0 %v1299_v63  ;;  %v811_v20 = vsel %vm810_vm1, 1, %v1299_v63 }
 0x47c   : > { %1249 = vset.pattern.permute.xlu1 %v1299_v63 }
 0x48e   : > { %718 = vperm.xlu0 %1248, %v716_v1  }
 0x492   : > { %908 = vperm.xlu0 %1248, %v906_v2  }
 0x501   : > { %v627_v3 = vpop.xlane.xlu0 %626 }
 0x502   : > { %v628_v4 = vsub.f32 %v621_v58, %v627_v3  ;;  %v710_v11 = vadd.f32 %v1419_v9, %v627_v3 }
 0x504   : > { %v629_v5 = vmul.f32 1.442695, %v628_v4 }
 0x506   : > { %1250 = vpow2.f32 %v629_v5 }
 0x509   : > { %v719_v15 = vpop.permute.xlu0 %718 }
 0x50a   : > { %vm720_vm0 = vcmp.eq.s32.totalorder %v719_v15, 1 }
 0x50d   : > { %v909_v47 = vpop.permute.xlu0 %908 }
 0x50e   : > { %vm910_vm4 = vcmp.eq.s32.totalorder %v909_v47, 1 }
 0x513   : > { %v1251_v6 = vpop.eup %1250 }
 0x514   : > { %1187 = vmatmul.mubr.msk.f32.vlgmr.msra.gmra.mxu0 %vm631_vm15, %v1251_v6 }
 0x515   : > { %1195 = vmatpush3.msk.msra.mxu0 %vm635_vm11, %v1364_v0  ;;  %1196 = vmatprep.mubr.msk.f32.mxu0 %vm1298_vm12, %v1297_v60 }
 0x5d4   : > { %v705_v7 = vpop.f32.mrf.mxu0 }
 0x5d5   : > { %1252 = vlog2.f32 %v705_v7 }
 0x5d6   : > { %v1188_v8 = vpop.f32.mrf.mxu0 }
 0x5e2   : > { %v1253_v10 = vpop.eup %1252 }
 0x5e3   : > { %v712_v12 = vmul.f32 0.6931472, %v1253_v10 }
 0x5e5   : > { %v713_v14 = vadd.f32 %v712_v12, %v710_v11 }
 0x5e7   : > { %v714_v16 = vadd.f32 %v713_v14, %v622_v13 }
 0x5e9   : > { %v721_v17 = vsel %vm720_vm0, %v714_v16, %v621_v58 }
 0x5ea   : > { %v726_v18 = vsel %vm624_vm10, %v721_v17, -inf }
 0x5eb   : > { %727 = vmax.xlane.f32.xlu1 %v726_v18 }
 0x5fc   : > { %813 = vperm.xlu1 %1249, %v811_v20  }
 0x674   : > { %v728_v21 = vpop.xlane.xlu1 %727 }
 0x675   : > { %v729_v22 = vsub.f32 %v721_v17, %v728_v21  ;;  %v805_v28 = vadd.f32 %v728_v21, %v1419_v9 }
 0x677   : > { %v730_v23 = vmul.f32 1.442695, %v729_v22 }
 0x678   : > { %v814_v30 = vpop.permute.xlu1 %813 }
 0x679   : > { %1254 = vpow2.f32 %v730_v23  ;;  %vm815_vm2 = vcmp.eq.s32.totalorder %v814_v30, 1 }
 0x686   : > { %v1255_v24 = vpop.eup %1254 }
 0x687   : > { %1192 = vmatmul.mubr.msk.f32.vlgmr.msra.gmra.mxu1 %vm631_vm15, %v1255_v24 }
 0x688   : > { %1200 = vmatpush3.msk.msra.mxu1 %vm635_vm11, %v1364_v0  ;;  %1201 = vmatprep.mubr.msk.f32.mxu1 %vm1298_vm12, %v1297_v60  ;;  %v1147_v0 = vld [vmem:[%s1374_s12 + $0x6] sm:$0x3] }
 0x689   : > { %vm1000_vm3 = vcmp.gt.f32.partialorder %v1147_v0, 0.0 }
 0x68a   : > { %v1001_v36 = vsel %vm1000_vm3, 1, %v1299_v63 }
 0x747   : > { %v801_v25 = vpop.f32.mrf.mxu1 }
 0x748   : > { %1256 = vlog2.f32 %v801_v25 }
 0x749   : > { %v1193_v26 = vpop.f32.mrf.mxu1 }
 0x755   : > { %v1257_v27 = vpop.eup %1256 }
 0x756   : > { %v807_v29 = vmul.f32 0.6931472, %v1257_v27 }
 0x758   : > { %v808_v32 = vadd.f32 %v807_v29, %v805_v28 }
 0x75a   : > { %v809_v33 = vadd.f32 %v1138_v31, %v808_v32 }
 0x75c   : > { %v816_v34 = vsel %vm815_vm2, %v809_v33, %v721_v17 }
 0x75d   : > { %v821_v35 = vsel %vm624_vm10, %v816_v34, -inf }
 0x75e   : > { %822 = vmax.xlane.f32.xlu1 %v821_v35 }
 0x76f   : > { %1003 = vperm.xlu1 %1249, %v1001_v36  }
 0x7e7   : > { %v823_v37 = vpop.xlane.xlu1 %822 }
 0x7e8   : > { %v824_v38 = vsub.f32 %v816_v34, %v823_v37  ;;  %v900_v44 = vadd.f32 %v823_v37, %v1419_v9 }
 0x7ea   : > { %v825_v39 = vmul.f32 1.442695, %v824_v38 }
 0x7eb   : > { %v1004_v62 = vpop.permute.xlu1 %1003 }
 0x7ec   : > { %1258 = vpow2.f32 %v825_v39  ;;  %vm1005_vm5 = vcmp.eq.s32.totalorder %v1004_v62, 1 }
 0x7f9   : > { %v1259_v40 = vpop.eup %1258 }
 0x7fa   : > { %1197 = vmatmul.mubr.msk.f32.vlgmr.msra.gmra.mxu0 %vm631_vm15, %v1259_v40 }
 0x8ba   : > { %v896_v41 = vpop.f32.mrf.mxu0 }
 0x8bb   : > { %1260 = vlog2.f32 %v896_v41 }
 0x8bc   : > { %v1198_v42 = vpop.f32.mrf.mxu0 }
 0x8c8   : > { %v1261_v43 = vpop.eup %1260 }
 0x8c9   : > { %v902_v45 = vmul.f32 0.6931472, %v1261_v43 }
 0x8cb   : > { %v903_v48 = vadd.f32 %v902_v45, %v900_v44 }
 0x8cd   : > { %v904_v49 = vadd.f32 %v1142_v46, %v903_v48 }
 0x8cf   : > { %v911_v50 = vsel %vm910_vm4, %v904_v49, %v816_v34 }
 0x8d0   : > { %v916_v51 = vsel %vm624_vm10, %v911_v50, -inf }
 0x8d1   : > { %917 = vmax.xlane.f32.xlu0 %v916_v51 }
 0x95a   : > { %v918_v52 = vpop.xlane.xlu0 %917 }
 0x95b   : > { %v919_v53 = vsub.f32 %v911_v50, %v918_v52  ;;  %v995_v59 = vadd.f32 %v918_v52, %v1419_v9 }
 0x95d   : > { %v920_v54 = vmul.f32 1.442695, %v919_v53 }
 0x95f   : > { %1262 = vpow2.f32 %v920_v54 }
 0x96c   : > { %v1263_v55 = vpop.eup %1262 }
 0x96d   : > { %1202 = vmatmul.mubr.msk.f32.vlgmr.msra.gmra.mxu1 %vm631_vm15, %v1263_v55 }
 0xa2d   : > { %v991_v56 = vpop.f32.mrf.mxu1 }
 0xa2e   : > { %1264 = vlog2.f32 %v991_v56 }
 0xa2f   : > { %v1203_v57 = vpop.f32.mrf.mxu1 }
 0xa3b   : > { %v1265_v58 = vpop.eup %1264 }
 0xa3c   : > { %v997_v60 = vmul.f32 0.6931472, %v1265_v58 }
 0xa3e   : > { %v998_v63 = vadd.f32 %v997_v60, %v995_v59 }
 0xa40   : > { %v999_v1 = vadd.f32 %v1146_v61, %v998_v63 }
 0xa42   : > { %v1006_v2 = vsel %vm1005_vm5, %v999_v1, %v911_v50 }
 0xa43   : > { %1007 = vst.msk [vmem:[#allocation2] sm:$0x3] %vm624_vm10, %v1006_v2 }
 0xa44 PF: > { %p1150_p7 = scmp.ne.s32.totalorder %s1284_s23, 1 }
 0xa46   : > { %1011 = sbr.rel (%p1150_p7) target bundleno = 2954 (0xb8a), region = 56 }
 0xa4b   : > { %v1012_v3 = vld [vmem:[#allocation2] sm:$0x3]  ;;  %vm1021_vm6 = vcmask 33792   ;;  %vm1034_vm7 = vcmask 1024  }
 0xa4c   : > { %v1151_v4 = vld [vmem:[%s1459_s2] ss:$0 sm:$0xff] }
 0xa4d   : > { %v1020_v5 = vadd.f32 %v1151_v4, %v1012_v3 }
 0xa4f   : > { %v1022_v6 = vsel %vm1021_vm6, %v1020_v5, -inf }
 0xa50   : > { %1023 = vmax.xlane.f32.xlu0 %v1022_v6 }
 0xad9   : > { %v1024_v7 = vpop.xlane.xlu0 %1023 }
 0xada   : > { %v1025_v8 = vsub.f32 %v1020_v5, %v1024_v7 }
 0xadc   : > { %v1026_v9 = vmul.f32 1.442695, %v1025_v8 }
 0xade   : > { %1266 = vpow2.f32 %v1026_v9 }
 0xaeb   : > { %v1267_v10 = vpop.eup %1266 }
 0xaec   : > { %v1028_v11 = vsel %vm1021_vm6, %v1267_v10, 0.0 }
 0xaed   : > { %1029 = vadd.xlane.f32.xlu0 %v1028_v11 }
 0xb76   : > { %v1030_v12 = vpop.xlane.xlu0 %1029 }
 0xb77   : > { %1268 = vlog2.f32 %v1030_v12 }
 0xb84   : > { %v1269_v13 = vpop.eup %1268 }
 0xb85   : > { %v1032_v14 = vmul.f32 0.6931472, %v1269_v13 }
 0xb87   : > { %v1033_v15 = vadd.f32 %v1032_v14, %v1024_v7 }
 0xb89   : > { %1035 = vst.msk [vmem:[%s1463_s6] sm:$0x3] %vm1034_vm7, %v1033_v15 }
 0xb8a PF: > { %s17_s25 = sadd.s32 1, %s1292_s25   ;;  %s1464_s23 = smov %s1288_s24 }
 0xb8b   : > { %p14_p8 = scmp.ge.s32.totalorder %s17_s25, 4   ;;  %s1465_s24 = smov %s1467_s0 }
 0xb8d   :  { %16 = sbr.rel (!%p14_p8) target bundleno = 2 (0x2), region = 101 }

</bundles_post_ra>
